<compile_context>
chip_gen: v6e
topology: v6e:2x2x1
jax: 0.10.0
libtpu: 0.0.40
codegen_flags: <defaults>
</compile_context>

<pallas_src>
import jax
import jax.numpy as jnp
from jax.experimental import pallas as pl
from jax.experimental.pallas import tpu as pltpu

NOUT = 3          # logits
NOUT_PAD = 128    # lane-dense padded output width
HIDDEN = 512      # Head hidden size


def _round_up(x, m):
    return ((x + m - 1) // m) * m


def _choose_tm(B):
    """Batch tile size: big tiles for large B, >=2 grid steps when possible
    (megacore), bf16-sublane rounded single step for small B."""
    if B < 128:
        return _round_up(B, 16)
    for tm in (512, 256, 128):
        if B >= 2 * tm:          # guarantees at least 2 "parallel" grid steps
            return tm
    return 128


# ----------------------------- Pallas kernel --------------------------------
def head_mlp_kernel(x_ref, w1_ref, b1_ref, w2_ref, b2_ref, o_ref):
    # x: (TM, 3H) bf16.  BatchNorms already folded into w1/b1 and w2/b2.
    x = x_ref[...]
    h = jnp.dot(x, w1_ref[...], preferred_element_type=jnp.float32) + b1_ref[...]
    h = jnp.maximum(h, 0.0).astype(jnp.bfloat16)
    o_ref[...] = (jnp.dot(h, w2_ref[...], preferred_element_type=jnp.float32)
                  + b2_ref[...])


def head_forward(extracted, params):
    """extracted: (B, 3H) (ideally already bf16) -> (B, 3) float32 via a
    batch-tiled Pallas call."""
    B, D = extracted.shape
    tm = _choose_tm(B)
    b_pad = _round_up(B, tm)

    x = extracted
    if x.dtype != jnp.bfloat16:
        x = x.astype(jnp.bfloat16)
    if b_pad != B:
        x = jnp.pad(x, ((0, b_pad - B), (0, 0)))

    # invariant (grid-pinned) operands: fetch once, single-buffered
    pinned = dict(pipeline_mode=pl.Buffered(1))

    out = pl.pallas_call(
        head_mlp_kernel,
        out_shape=jax.ShapeDtypeStruct((b_pad, NOUT_PAD), jnp.float32),
        grid_spec=pltpu.PrefetchScalarGridSpec(
            num_scalar_prefetch=0,
            grid=(b_pad // tm,),
            in_specs=[
                pl.BlockSpec((tm, D), lambda i: (i, 0)),                       # x tile
                pl.BlockSpec((D, HIDDEN), lambda i: (0, 0), **pinned),         # w1
                pl.BlockSpec((1, HIDDEN), lambda i: (0, 0), **pinned),         # b1
                pl.BlockSpec((HIDDEN, NOUT_PAD), lambda i: (0, 0), **pinned),  # w2
                pl.BlockSpec((1, NOUT_PAD), lambda i: (0, 0), **pinned),       # b2
            ],
            out_specs=pl.BlockSpec((tm, NOUT_PAD), lambda i: (i, 0)),
        ),
        compiler_params=pltpu.CompilerParams(
            dimension_semantics=("parallel",),        # shard batch tiles over TCs
            vmem_limit_bytes=48 * 1024 * 1024,        # <= v5e default needs a raise;
        ),                                            # comfortable under v7x 64 MiB
    )(x, params["w1"], params["b1"], params["w2"], params["b2"])
    return out[:B, :NOUT]


# ------------------------- host-side parameter prep --------------------------
def fold_batchnorm(gamma, beta, running_mean, running_var, eps=1e-5):
    scale = gamma / jnp.sqrt(running_var + eps)
    bias = beta - running_mean * scale
    return scale, bias


def kaiming_normal(key, fan_in, shape):
    # matches nn.init.kaiming_normal_ (fan_in, relu gain) up to RNG choice
    return jax.random.normal(key, shape, jnp.float32) * jnp.sqrt(2.0 / fan_in)


def make_raw_head_params(key, hidden):
    H3 = hidden * 3
    k1, k2 = jax.random.split(key)
    return dict(
        # BatchNorm1d: weight=1, bias=0, running stats at defaults (mean 0, var 1)
        bn1=(jnp.ones(H3), jnp.zeros(H3), jnp.zeros(H3), jnp.ones(H3)),
        bn2=(jnp.ones(HIDDEN), jnp.zeros(HIDDEN),
             jnp.zeros(HIDDEN), jnp.ones(HIDDEN)),
        # Linear layers stored as (in, out) = transposed PyTorch weight
        w1=kaiming_normal(k1, H3, (H3, HIDDEN)),
        b1=jnp.zeros((HIDDEN,), jnp.float32),
        w2=kaiming_normal(k2, HIDDEN, (HIDDEN, NOUT)),
        b2=jnp.zeros((NOUT,), jnp.float32),
    )


def prepare_head_params(raw):
    """Fold BN affines into the adjacent Linears, pad output layer to 128 lanes,
    cast matmul operands to bf16.
    Note: if running_var is tiny (huge BN scale) the bf16 cast of w1 can lose
    precision; keep w1 f32 in that case."""
    s1, t1 = fold_batchnorm(*raw["bn1"])
    s2, t2 = fold_batchnorm(*raw["bn2"])
    # y = x*s1 + t1 ; y@w1 + b1 == x@(s1[:,None]*w1) + (t1@w1 + b1)
    w1 = s1[:, None] * raw["w1"]
    b1 = raw["b1"] + t1 @ raw["w1"]
    # z = h*s2 + t2 ; z@w2 + b2 == h@(s2[:,None]*w2) + (t2@w2 + b2)
    w2 = s2[:, None] * raw["w2"]
    b2 = raw["b2"] + t2 @ raw["w2"]
    # lane-dense padding of the tiny output projection
    w2p = jnp.zeros((HIDDEN, NOUT_PAD), jnp.float32).at[:, :NOUT].set(w2)
    b2p = jnp.zeros((NOUT_PAD,), jnp.float32).at[:NOUT].set(b2)
    return dict(
        w1=w1.astype(jnp.bfloat16),
        b1=b1[None, :].astype(jnp.float32),
        w2=w2p.astype(jnp.bfloat16),
        b2=b2p[None, :].astype(jnp.float32),
    )


# ------------------------------ glue (plain JAX) -----------------------------
def fake_bert(token_ids, emb, enc_w, enc_b):
    # TODO(synk): stand-in for pretrained BertModel (embedding + tanh dense).
    x = emb[token_ids]                              # (B, S, H)
    return jnp.tanh(x @ enc_w + enc_b)              # (B, S, H)


def gather_offsets(bert_outputs, offsets, dtype=jnp.bfloat16):
    # bert_outputs.gather(1, offsets.expand(..., H)).view(B, -1)
    # emitted directly in bf16 so the (B,3H) intermediate is written once.
    B, S, H = bert_outputs.shape
    idx = offsets[:, :, None]                       # (B, 3, 1)
    gathered = jnp.take_along_axis(bert_outputs, idx, axis=1)   # (B, 3, H)
    return gathered.astype(dtype).reshape(B, 3 * H)


def gap_model_forward(token_ids, offsets, bert_params, head_params):
    bert_outputs = fake_bert(token_ids, *bert_params)
    extracted = gather_offsets(bert_outputs, offsets)           # bf16 (B, 3H)
    return head_forward(extracted, head_params)


# pure-JAX f32 reference for the head (un-folded BN, eval-mode dropout)
def head_reference(extracted, raw):
    s1, t1 = fold_batchnorm(*raw["bn1"])
    s2, t2 = fold_batchnorm(*raw["bn2"])
    y = extracted * s1 + t1
    h = jnp.maximum(y @ raw["w1"] + raw["b1"], 0.0)
    z = h * s2 + t2
    return z @ raw["w2"] + raw["b2"]


if __name__ == "__main__":
    B, S, H, VOCAB = 2, 8, 32, 100   # small shapes; real model has H=768/1024

    key = jax.random.PRNGKey(0)
    k_tok, k_off, k_emb, k_enc, k_head, k_big = jax.random.split(key, 6)

    token_ids = jax.random.randint(k_tok, (B, S), 1, VOCAB, jnp.int32)
    offsets = jax.random.randint(k_off, (B, 3), 0, S, jnp.int32)

    emb = jax.random.normal(k_emb, (VOCAB, H), jnp.float32) * 0.02
    enc_w = jax.random.normal(k_enc, (H, H), jnp.float32) * (1.0 / jnp.sqrt(H))
    enc_b = jnp.zeros((H,), jnp.float32)
    bert_params = (emb, enc_w, enc_b)

    raw_head = make_raw_head_params(k_head, H)
    head_params = prepare_head_params(raw_head)

    # --- small-batch end-to-end run ------------------------------------------
    out = gap_model_forward(token_ids, offsets, bert_params, head_params)
    out = jax.block_until_ready(out)
    assert out.shape == (B, NOUT) and out.dtype == jnp.float32

    # correctness check of the Pallas head against plain-JAX f32 reference
    # (tolerance loosened slightly for bf16 matmul operands)
    extracted_f32 = gather_offsets(fake_bert(token_ids, *bert_params), offsets,
                                   dtype=jnp.float32)
    ref = head_reference(extracted_f32, raw_head)
    assert jnp.allclose(out, ref, atol=2e-2, rtol=2e-2), (out, ref)

    # --- larger-batch check: exercises multi-step grid + batch padding --------
    B2 = 300                         # -> tm=128, b_pad=384, grid=3
    big_x = jnp.tanh(jax.random.normal(k_big, (B2, 3 * H), jnp.float32))
    out_big = head_forward(big_x.astype(jnp.bfloat16), head_params)
    out_big = jax.block_until_ready(out_big)
    assert out_big.shape == (B2, NOUT) and out_big.dtype == jnp.float32
    ref_big = head_reference(big_x, raw_head)
    assert jnp.allclose(out_big, ref_big, atol=3e-2, rtol=3e-2)

    print("KERNEL_OK")
</pallas_src>

<mosaic_0001>
module attributes {stable_mosaic.version = 11 : i64} {
  func.func @head_mlp_kernel(%arg0: i32, %arg1: memref<16x96xbf16, #tpu.memory_space<vmem>>, %arg2: memref<96x512xbf16, #tpu.memory_space<vmem>>, %arg3: memref<1x512xf32, #tpu.memory_space<vmem>>, %arg4: memref<512x128xbf16, #tpu.memory_space<vmem>>, %arg5: memref<1x128xf32, #tpu.memory_space<vmem>>, %arg6: memref<16x128xf32, #tpu.memory_space<vmem>>) attributes {dimension_semantics = [#tpu.dimension_semantics<parallel>], iteration_bounds = array<i64: 1>, scalar_prefetch = 0 : i64, scratch_operands = 0 : i64, tpu.core_type = #tpu.core_type<tc>, window_params = [{transform_indices = @transform_0, window_bounds = array<i64: 16, 96>}, {pipeline_mode = #tpu.pipeline_mode<synchronous>, transform_indices = @transform_1, window_bounds = array<i64: 96, 512>}, {pipeline_mode = #tpu.pipeline_mode<synchronous>, transform_indices = @transform_2, window_bounds = array<i64: 1, 512>}, {pipeline_mode = #tpu.pipeline_mode<synchronous>, transform_indices = @transform_3, window_bounds = array<i64: 512, 128>}, {pipeline_mode = #tpu.pipeline_mode<synchronous>, transform_indices = @transform_4, window_bounds = array<i64: 1, 128>}, {transform_indices = @transform_5, window_bounds = array<i64: 16, 128>}]} {
    %c0 = arith.constant 0 : index
    %c0_0 = arith.constant 0 : index
    %0 = vector.load %arg1[%c0, %c0_0] : memref<16x96xbf16, #tpu.memory_space<vmem>>, vector<16x96xbf16>
    %c0_1 = arith.constant 0 : index
    %c0_2 = arith.constant 0 : index
    %1 = vector.load %arg2[%c0_1, %c0_2] : memref<96x512xbf16, #tpu.memory_space<vmem>>, vector<96x512xbf16>
    %cst = arith.constant dense<0.000000e+00> : vector<16x512xf32>
    %2 = tpu.matmul %0, %1, %cst {dimension_numbers = #tpu.dot_dimension_numbers<[1], [0], [0], [1], [0, 0, 1, 1], [], []>} : vector<16x96xbf16>, vector<96x512xbf16>, vector<16x512xf32> -> vector<16x512xf32>
    %c0_3 = arith.constant 0 : index
    %c0_4 = arith.constant 0 : index
    %3 = vector.load %arg3[%c0_3, %c0_4] : memref<1x512xf32, #tpu.memory_space<vmem>>, vector<1x512xf32>
    %4 = vector.broadcast %3 : vector<1x512xf32> to vector<16x512xf32>
    %5 = arith.addf %2, %4 : vector<16x512xf32>
    %cst_5 = arith.constant 0.000000e+00 : f32
    %6 = vector.broadcast %cst_5 : f32 to vector<16x512xf32>
    %7 = arith.maximumf %5, %6 : vector<16x512xf32>
    %8 = arith.truncf %7 : vector<16x512xf32> to vector<16x512xbf16>
    %c0_6 = arith.constant 0 : index
    %c0_7 = arith.constant 0 : index
    %9 = vector.load %arg4[%c0_6, %c0_7] : memref<512x128xbf16, #tpu.memory_space<vmem>>, vector<512x128xbf16>
    %cst_8 = arith.constant dense<0.000000e+00> : vector<16x128xf32>
    %10 = tpu.matmul %8, %9, %cst_8 {dimension_numbers = #tpu.dot_dimension_numbers<[1], [0], [0], [1], [0, 0, 1, 1], [], []>} : vector<16x512xbf16>, vector<512x128xbf16>, vector<16x128xf32> -> vector<16x128xf32>
    %c0_9 = arith.constant 0 : index
    %c0_10 = arith.constant 0 : index
    %11 = vector.load %arg5[%c0_9, %c0_10] : memref<1x128xf32, #tpu.memory_space<vmem>>, vector<1x128xf32>
    %12 = vector.broadcast %11 : vector<1x128xf32> to vector<16x128xf32>
    %13 = arith.addf %10, %12 : vector<16x128xf32>
    %c0_11 = arith.constant 0 : index
    %c0_12 = arith.constant 0 : index
    %14 = vector.load %arg6[%c0_11, %c0_12] : memref<16x128xf32, #tpu.memory_space<vmem>>, vector<16x128xf32>
    tpu.vector_store %arg6[%c0_11, %c0_12], %13 {strides = array<i32>} : memref<16x128xf32, #tpu.memory_space<vmem>>, vector<16x128xf32>,
    return
  }
  func.func @transform_0(%arg0: i32) -> (i32, i32) {
    %c0_i32 = arith.constant 0 : i32
    %c0_i32_0 = arith.constant 0 : i32
    return %arg0, %c0_i32 : i32, i32
  }
  func.func @transform_1(%arg0: i32) -> (i32, i32) {
    %c0_i32 = arith.constant 0 : i32
    %c0_i32_0 = arith.constant 0 : i32
    %c0_i32_1 = arith.constant 0 : i32
    return %c0_i32, %c0_i32_0 : i32, i32
  }
  func.func @transform_2(%arg0: i32) -> (i32, i32) {
    %c0_i32 = arith.constant 0 : i32
    %c0_i32_0 = arith.constant 0 : i32
    %c0_i32_1 = arith.constant 0 : i32
    return %c0_i32, %c0_i32_0 : i32, i32
  }
  func.func @transform_3(%arg0: i32) -> (i32, i32) {
    %c0_i32 = arith.constant 0 : i32
    %c0_i32_0 = arith.constant 0 : i32
    %c0_i32_1 = arith.constant 0 : i32
    return %c0_i32, %c0_i32_0 : i32, i32
  }
  func.func @transform_4(%arg0: i32) -> (i32, i32) {
    %c0_i32 = arith.constant 0 : i32
    %c0_i32_0 = arith.constant 0 : i32
    %c0_i32_1 = arith.constant 0 : i32
    return %c0_i32, %c0_i32_0 : i32, i32
  }
  func.func @transform_5(%arg0: i32) -> (i32, i32) {
    %c0_i32 = arith.constant 0 : i32
    %c0_i32_0 = arith.constant 0 : i32
    return %arg0, %c0_i32 : i32, i32
  }
}

</mosaic_0001>

<bundles_post_ra>
// kernel: tpu_custom_call.1
= control target key start
LH: loop header
LB: loop body
LE: loop exit
PB: predicated region body
PF: predicated region fallthrough
CT: control target
= control target key end

     0   :  { %10 = vsyncpa [#allocation3], 0  ;;  %s1069_s0 = inlined_call_operand.hbm [shape: bf16[16,96], index: 0, kind: input, shape index: {}]   ;;  %s1070_s1 = inlined_call_operand.hbm [shape: bf16[96,512], index: 1, kind: input, shape index: {}]   ;;  %s1071_s2 = inlined_call_operand.hbm [shape: f32[1,512], index: 2, kind: input, shape index: {}]   ;;  %s1072_s3 = inlined_call_operand.hbm [shape: bf16[512,128], index: 3, kind: input, shape index: {}]   ;;  %s1073_s4 = inlined_call_operand.vmem [shape: f32[1,128], index: 4, kind: input, shape index: {}]   ;;  %s1074_s5 = inlined_call_operand.hbm [shape: f32[16,128], index: 5, kind: output, shape index: {}]  }
   0x1   :  { %11 = vsyncpa [#allocation6], 0 }
   0x2   :  { %12 = vsyncpa [#allocation9], 0 }
   0x3   :  { %13 = vsyncpa [#allocation4], 0  ;;  %s1009_s18 = smov [#allocation5]  }
   0x4   :  { %s31_s19 = sshll.u32 %s1009_s18, 4  ;;  %s32_s19 = int_to_ptr.vmem [resolvable:$true] %s31_s19 }
   0x5   :  { %s909_s20 = scalar_lea.vmem %s32_s19, 3072  ;;  %p914_p1 = scmp.lt.s32.totalorder %s32_s19, %s32_s19 }
   0x6   :  { %p910_p0 = scmp.ne.s32.totalorder %s32_s19, %s909_s20  ;;  %p915_p2 = scmp.lt.s32.totalorder %s909_s20, %s909_s20 }
   0x8   :  { %p916_p3 = por %p915_p2, %p914_p1 }
   0xa   :  { %p917_p4 = pnand %p916_p3, %p910_p0 }
   0xc   :  { %920 = shalt.err (!%p917_p4)
}
   0xd   :  { %s1010_s21 = smov 256   ;;  %s1011_s22 = smov 16  }
   0xe   :  { %37 = dma.hbm_to_vmem [thread:$0]  %s1070_s1, 3072, %s32_s19, [#allocation6], %s1010_s21, %s1010_s21, %s1011_s22  }
   0xf   :  { %s1012_s25 = smov [#allocation2]  }
  0x10   :  { %s19_s26 = sshll.u32 %s1012_s25, 4  ;;  %s20_s26 = int_to_ptr.vmem [resolvable:$true] %s19_s26 }
  0x11   :  { %s929_s27 = scalar_lea.vmem %s20_s26, 128  ;;  %p934_p6 = scmp.lt.s32.totalorder %s20_s26, %s20_s26 }
  0x12   :  { %p930_p5 = scmp.ne.s32.totalorder %s20_s26, %s929_s27  ;;  %p935_p7 = scmp.lt.s32.totalorder %s929_s27, %s929_s27 }
  0x14   :  { %p936_p8 = por %p935_p7, %p934_p6 }
  0x16   :  { %p937_p9 = pnand %p936_p8, %p930_p5 }
  0x18   :  { %940 = shalt.err (!%p937_p9)
}
  0x19   :  { %s1013_s28 = smov 64   ;;  %s1014_s29 = smov 4  }
  0x1a   :  { %25 = dma.hbm_to_vmem [thread:$0]  %s1069_s0, 128, %s20_s26, [#allocation3], %s1013_s28, %s1013_s28, %s1014_s29  }
  0x1b   :  { %s1015_s7 = smov [#allocation7]   ;;  %s1016_s9 = smov [#allocation8]  }
  0x1c   :  { %s44_s8 = sshll.u32 %s1015_s7, 4  ;;  %s53_s1 = sshll.u32 %s1016_s9, 4  ;;  %s45_s8 = int_to_ptr.vmem [resolvable:$true] %s44_s8  ;;  %s54_s1 = int_to_ptr.vmem [resolvable:$true] %s53_s1 }
  0x1d   :  { %s949_s10 = scalar_lea.vmem %s45_s8, 64  ;;  %p954_p11 = scmp.lt.s32.totalorder %s45_s8, %s45_s8 }
  0x1e   :  { %p950_p10 = scmp.ne.s32.totalorder %s45_s8, %s949_s10  ;;  %p955_p12 = scmp.lt.s32.totalorder %s949_s10, %s949_s10 }
  0x20   :  { %p956_p13 = por %p955_p12, %p954_p11 }
  0x22   :  { %p957_p0 = pnand %p956_p13, %p950_p10 }
  0x24   :  { %960 = shalt.err (!%p957_p0)
}
  0x25   :  { %47 = dma.hbm_to_vmem [thread:$0]  %s1071_s2, 64, %s45_s8, [#allocation6]  }
  0x26   :  { %s969_s13 = scalar_lea.vmem %s54_s1, 4096  ;;  %p974_p2 = scmp.lt.s32.totalorder %s54_s1, %s54_s1 }
  0x27   :  { %p970_p1 = scmp.ne.s32.totalorder %s54_s1, %s969_s13  ;;  %p975_p3 = scmp.lt.s32.totalorder %s969_s13, %s969_s13 }
  0x29   :  { %p976_p4 = por %p975_p3, %p974_p2 }
  0x2b   :  { %p977_p5 = pnand %p976_p4, %p970_p1 }
  0x2d   :  { %980 = shalt.err (!%p977_p5)
}
  0x2e   :  { %59 = dma.hbm_to_vmem [thread:$0]  %s1072_s3, 4096, %s54_s1, [#allocation9], %s1013_s28, %s1013_s28, %s1014_s29  }
  0x2f   :  { %1001 = dma.done.wait [#allocation3], 128  }
  0x30   :  { %1002 = vsyncadd [#allocation3], 4294967168 }
  0x31   :  { %1003 = dma.done.wait [#allocation6], 3136  }
  0x32   :  { %1004 = vsyncadd [#allocation6], 4294964160 }
  0x33   :  { %1005 = dma.done.wait [#allocation9], 4096  }
  0x34   :  { %1006 = vsyncadd [#allocation9], 4294963200  ;;  %v1017_v0 = vmov 0   ;;  %v832_v1 = vld [vmem:[#allocation5 + $0xa4] ss:$16 sps:$4 sm:$0xff]   ;;  %v869_v25 = vld [vmem:[#allocation8 + $0x78] sm:$0xff]   ;;  %v103_v58 = vlaneseq }
  0x35   :  { %284 = vmatprep.mubr.bf16.mxu0 %v1017_v0  ;;  %327 = vmatprep.mubr.bf16.mxu1 %v1017_v0  ;;  %v834_v2 = vld [vmem:[#allocation5 + $0xac] ss:$16 sps:$4 sm:$0xff]   ;;  %v836_v3 = vld [vmem:[#allocation5 + $0xa0] ss:$16 sps:$4 sm:$0xff]   ;;  %v837_v4 = vld [vmem:[#allocation5 + $0xa8] ss:$16 sps:$4 sm:$0xff]  }
  0x36   :  { %256 = vmatprep.subr.bf16.mxu0 %v832_v1  ;;  %299 = vmatprep.subr.bf16.mxu1 %v834_v2  ;;  %v838_v5 = vld [vmem:[#allocation5 + $0x84] ss:$16 sps:$4 sm:$0xff]   ;;  %v840_v6 = vld [vmem:[#allocation5 + $0x8c] ss:$16 sps:$4 sm:$0xff]   ;;  %v842_v7 = vld [vmem:[#allocation5 + $0x80] ss:$16 sps:$4 sm:$0xff]  }
  0x37   :  { %257 = vmatpush1.bf16.msra.mxu0 %v836_v3  ;;  %300 = vmatpush1.bf16.msra.mxu1 %v837_v4  ;;  %v843_v8 = vld [vmem:[#allocation5 + $0x88] ss:$16 sps:$4 sm:$0xff]   ;;  %v844_v9 = vld [vmem:[#allocation5 + $0x64] ss:$16 sps:$4 sm:$0xff]   ;;  %v846_v10 = vld [vmem:[#allocation5 + $0x6c] ss:$16 sps:$4 sm:$0xff]  }
  0x38   :  { %258 = vmatprep.subr.bf16.mxu0 %v838_v5  ;;  %301 = vmatprep.subr.bf16.mxu1 %v840_v6  ;;  %v848_v11 = vld [vmem:[#allocation5 + $0x60] ss:$16 sps:$4 sm:$0xff]   ;;  %v849_v12 = vld [vmem:[#allocation5 + $0x68] ss:$16 sps:$4 sm:$0xff]   ;;  %v850_v13 = vld [vmem:[#allocation5 + $0x44] ss:$16 sps:$4 sm:$0xff]  }
  0x39   :  { %v852_v14 = vld [vmem:[#allocation5 + $0x4c] ss:$16 sps:$4 sm:$0xff]   ;;  %v854_v15 = vld [vmem:[#allocation5 + $0x40] ss:$16 sps:$4 sm:$0xff]   ;;  %v855_v16 = vld [vmem:[#allocation5 + $0x48] ss:$16 sps:$4 sm:$0xff]  }
  0x3a   :  { %v856_v17 = vld [vmem:[#allocation5 + $0x24] ss:$16 sps:$4 sm:$0xff]   ;;  %v858_v18 = vld [vmem:[#allocation5 + $0x2c] ss:$16 sps:$4 sm:$0xff]   ;;  %v860_v19 = vld [vmem:[#allocation5 + $0x20] ss:$16 sps:$4 sm:$0xff]  }
  0x3b   :  { %259 = vmatpush1.bf16.msra.mxu0 %v842_v7  ;;  %302 = vmatpush1.bf16.msra.mxu1 %v843_v8  ;;  %v861_v20 = vld [vmem:[#allocation5 + $0x28] ss:$16 sps:$4 sm:$0xff]   ;;  %v862_v21 = vld [vmem:[#allocation5 + $0x4] ss:$16 sps:$4 sm:$0xff]   ;;  %v864_v22 = vld [vmem:[#allocation5 + $0xc] ss:$16 sps:$4 sm:$0xff]  }
  0x3c   :  { %260 = vmatprep.subr.bf16.mxu0 %v844_v9  ;;  %303 = vmatprep.subr.bf16.mxu1 %v846_v10  ;;  %v866_v23 = vld [vmem:[#allocation5] ss:$16 sps:$4 sm:$0xff]   ;;  %v867_v24 = vld [vmem:[#allocation5 + $0x8] ss:$16 sps:$4 sm:$0xff]   ;;  %vm248_vm0 = vcmask 785408   ;;  %v104_v59 = vshrl.u32 %v103_v58, 7 }
  0x3d   :  { %v868_v26 = vld [vmem:[#allocation2] sm:$0xff]   ;;  %v877_v34 = vld [vmem:[#allocation8 + $0x68] sm:$0xff]   ;;  %v881_v38 = vld [vmem:[#allocation8 + $0x60] sm:$0xff]   ;;  %s1018_s15 = smov [#allocation10]  }
  0x3e   :  { %v870_v27 = vld [vmem:[#allocation8 + $0xf8] sm:$0xff]   ;;  %v873_v30 = vld [vmem:[#allocation8 + $0x70] sm:$0xff]   ;;  %v878_v35 = vld [vmem:[#allocation8 + $0xe8] sm:$0xff]   ;;  %v109_v60 = vsub.s32 1, %v104_v59  ;;  %v117_v61 = vsub.s32 3, %v104_v59  ;;  %v105_v62 = vsub.s32 0, %v104_v59 }
  0x3f   :  { %261 = vmatpush1.bf16.msra.mxu0 %v848_v11  ;;  %304 = vmatpush1.bf16.msra.mxu1 %v849_v12  ;;  %v871_v28 = vld [vmem:[#allocation8 + $0x38] sm:$0xff]   ;;  %v874_v31 = vld [vmem:[#allocation8 + $0xf0] sm:$0xff]   ;;  %v879_v36 = vld [vmem:[#allocation8 + $0x28] sm:$0xff]   ;;  %v113_v63 = vsub.s32 2, %v104_v59  ;;  %s702_s16 = sshll.u32 %s1018_s15, 4  ;;  %s703_s16 = int_to_ptr.vmem [resolvable:$true] %s702_s16 }
  0x40   :  { %262 = vmatprep.subr.bf16.mxu0 %v850_v13  ;;  %305 = vmatprep.subr.bf16.mxu1 %v852_v14  ;;  %v872_v29 = vld [vmem:[#allocation8 + $0xb8] sm:$0xff]   ;;  %v875_v32 = vld [vmem:[#allocation8 + $0x30] sm:$0xff]   ;;  %v880_v37 = vld [vmem:[#allocation8 + $0xa8] sm:$0xff]   ;;  %p986_p7 = scmp.lt.s32.totalorder %s703_s16, %s703_s16 }
  0x41   :  { %v876_v33 = vld [vmem:[#allocation8 + $0xb0] sm:$0xff]   ;;  %v882_v39 = vld [vmem:[#allocation8 + $0xe0] sm:$0xff]   ;;  %v885_v42 = vld [vmem:[#allocation8 + $0x58] sm:$0xff]  }
  0x42   :  { %v883_v40 = vld [vmem:[#allocation8 + $0x20] sm:$0xff]   ;;  %v886_v43 = vld [vmem:[#allocation8 + $0xd8] sm:$0xff]   ;;  %v889_v46 = vld [vmem:[#allocation8 + $0x50] sm:$0xff]  }
  0x43   :  { %263 = vmatpush1.bf16.msra.mxu0 %v854_v15  ;;  %306 = vmatpush1.bf16.msra.mxu1 %v855_v16  ;;  %v884_v41 = vld [vmem:[#allocation8 + $0xa0] sm:$0xff]   ;;  %v887_v44 = vld [vmem:[#allocation8 + $0x18] sm:$0xff]   ;;  %v890_v47 = vld [vmem:[#allocation8 + $0xd0] sm:$0xff]  }
  0x44   :  { %264 = vmatprep.subr.bf16.mxu0 %v856_v17  ;;  %307 = vmatprep.subr.bf16.mxu1 %v858_v18  ;;  %v888_v45 = vld [vmem:[#allocation8 + $0x98] sm:$0xff]   ;;  %v891_v48 = vld [vmem:[#allocation8 + $0x10] sm:$0xff]   ;;  %v893_v50 = vld [vmem:[#allocation8 + $0x48] sm:$0xff]  }
  0x45   :  { %v892_v49 = vld [vmem:[#allocation8 + $0x90] sm:$0xff]   ;;  %v894_v51 = vld [vmem:[#allocation8 + $0xc8] sm:$0xff]   ;;  %v897_v54 = vld [vmem:[#allocation8 + $0x40] sm:$0xff]  }
  0x46   :  { %v895_v52 = vld [vmem:[#allocation8 + $0x8] sm:$0xff]   ;;  %v898_v55 = vld [vmem:[#allocation8 + $0xc0] sm:$0xff]   ;;  %v101_v0 = vld [vmem:[#allocation7] sm:$0xf] }
  0x47   :  { %265 = vmatpush1.bf16.msra.mxu0 %v860_v19  ;;  %308 = vmatpush1.bf16.msra.mxu1 %v861_v20  ;;  %v896_v53 = vld [vmem:[#allocation8 + $0x88] sm:$0xff]   ;;  %v899_v56 = vld [vmem:[#allocation8] sm:$0xff]   ;;  %v110_v3 = vrot.slane %v101_v0, %v109_v60  ;;  %v118_v4 = vrot.slane %v101_v0, %v117_v61  ;;  %v106_v5 = vrot.slane %v101_v0, %v105_v62 }
  0x48   :  { %266 = vmatprep.subr.bf16.mxu0 %v862_v21  ;;  %309 = vmatprep.subr.bf16.mxu1 %v864_v22  ;;  %v900_v57 = vld [vmem:[#allocation8 + $0x80] sm:$0xff]   ;;  %v114_v6 = vrot.slane %v101_v0, %v113_v63 }
  0x4b   :  { %267 = vmatpush1.bf16.msra.mxu0 %v866_v23  ;;  %310 = vmatpush1.bf16.msra.mxu1 %v867_v24 }
  0x4c   :  { %776 = vmatprep.subr.bf16.mxu0 %v869_v25  ;;  %798 = vmatprep.subr.bf16.mxu1 %v870_v27 }
  0x4e   :  { %741 = vmatmul.mubr.msk.bf16.vlgmr.msra.gmra.mxu0 %vm248_vm0, %v868_v26  ;;  %742 = vmatmul.mubr.msk.bf16.vlgmr.msra.gmra.mxu1 %vm248_vm0, %v868_v26 }
  0x4f   :  { %777 = vmatpush3.bf16.msra.mxu0 %v871_v28  ;;  %799 = vmatpush3.bf16.msra.mxu1 %v872_v29 }
  0x50   :  { %778 = vmatprep.subr.bf16.mxu0 %v873_v30  ;;  %800 = vmatprep.subr.bf16.mxu1 %v874_v31 }
  0x53   :  { %779 = vmatpush3.bf16.msra.mxu0 %v875_v32  ;;  %801 = vmatpush3.bf16.msra.mxu1 %v876_v33 }
  0x54   :  { %780 = vmatprep.subr.bf16.mxu0 %v877_v34  ;;  %802 = vmatprep.subr.bf16.mxu1 %v878_v35  ;;  %v743_v35 = vld [vmem:[%s1073_s4] ss:$0 sm:$0xff]  ;;  %s981_s4 = scalar_lea.vmem %s703_s16, 256 }
  0x55   :  { %p982_p6 = scmp.ne.s32.totalorder %s703_s16, %s981_s4  ;;  %p987_p8 = scmp.lt.s32.totalorder %s981_s4, %s981_s4 }
  0x57   :  { %781 = vmatpush3.bf16.msra.mxu0 %v879_v36  ;;  %803 = vmatpush3.bf16.msra.mxu1 %v880_v37  ;;  %p988_p9 = por %p987_p8, %p986_p7 }
  0x58   :  { %782 = vmatprep.subr.bf16.mxu0 %v881_v38  ;;  %804 = vmatprep.subr.bf16.mxu1 %v882_v39 }
  0x59   :  { %p989_p10 = pnand %p988_p9, %p982_p6 }
  0x5b   :  { %783 = vmatpush3.bf16.msra.mxu0 %v883_v40  ;;  %805 = vmatpush3.bf16.msra.mxu1 %v884_v41 }
  0x5c   :  { %784 = vmatprep.subr.bf16.mxu0 %v885_v42  ;;  %806 = vmatprep.subr.bf16.mxu1 %v886_v43 }
  0x5f   :  { %785 = vmatpush3.bf16.msra.mxu0 %v887_v44  ;;  %807 = vmatpush3.bf16.msra.mxu1 %v888_v45 }
  0x60   :  { %786 = vmatprep.subr.bf16.mxu0 %v889_v46  ;;  %808 = vmatprep.subr.bf16.mxu1 %v890_v47 }
  0x63   :  { %787 = vmatpush3.bf16.msra.mxu0 %v891_v48  ;;  %809 = vmatpush3.bf16.msra.mxu1 %v892_v49 }
  0x64   :  { %788 = vmatprep.subr.bf16.mxu0 %v893_v50  ;;  %810 = vmatprep.subr.bf16.mxu1 %v894_v51 }
  0x67   :  { %789 = vmatpush3.bf16.msra.mxu0 %v895_v52  ;;  %811 = vmatpush3.bf16.msra.mxu1 %v896_v53 }
  0x68   :  { %790 = vmatprep.subr.bf16.mxu0 %v897_v54  ;;  %812 = vmatprep.subr.bf16.mxu1 %v898_v55 }
  0x6b   :  { %791 = vmatpush3.bf16.msra.mxu0 %v899_v56  ;;  %813 = vmatpush3.bf16.msra.mxu1 %v900_v57 }
 0x10e   :  { %v286_v1 = vpop.f32.mrf.mxu0  ;;  %v329_v2 = vpop.f32.mrf.mxu1 }
 0x10f   :  { %v287_v15 = vadd.f32 %v286_v1, %v106_v5  ;;  %v330_v16 = vadd.f32 %v329_v2, %v114_v6 }
 0x110   :  { %v288_v7 = vpop.f32.mrf.mxu0  ;;  %v331_v8 = vpop.f32.mrf.mxu1 }
 0x111   :  { %v289_v11 = vadd.f32 %v288_v7, %v110_v3  ;;  %v332_v12 = vadd.f32 %v331_v8, %v118_v4  ;;  %v338_v27 = vmax.f32 %v287_v15, 0.0  ;;  %v340_v28 = vmax.f32 %v330_v16, 0.0 }
 0x112   :  { %v290_v9 = vpop.f32.mrf.mxu0  ;;  %v333_v10 = vpop.f32.mrf.mxu1 }
 0x113   :  { %v291_v13 = vadd.f32 %v290_v9, %v106_v5  ;;  %v334_v14 = vadd.f32 %v333_v10, %v114_v6  ;;  %v339_v23 = vmax.f32 %v289_v11, 0.0  ;;  %v341_v24 = vmax.f32 %v332_v12, 0.0 }
 0x114   :  { %v292_v17 = vpop.f32.mrf.mxu0  ;;  %v335_v18 = vpop.f32.mrf.mxu1 }
 0x115   :  { %v293_v19 = vadd.f32 %v292_v17, %v110_v3  ;;  %v336_v20 = vadd.f32 %v335_v18, %v118_v4  ;;  %v342_v21 = vmax.f32 %v291_v13, 0.0  ;;  %v344_v22 = vmax.f32 %v334_v14, 0.0 }
 0x117   :  { %v343_v25 = vmax.f32 %v293_v19, 0.0  ;;  %v345_v26 = vmax.f32 %v336_v20, 0.0  ;;  %v346_v31 = vpack.c.bf16 %v342_v21, %v338_v27  ;;  %v348_v32 = vpack.c.bf16 %v344_v22, %v340_v28 }
 0x119   :  { %v347_v29 = vpack.c.bf16 %v343_v25, %v339_v23  ;;  %v349_v30 = vpack.c.bf16 %v345_v26, %v341_v24 }
 0x11b   :  { %645 = vmatprep.mubr.bf16.mxu0 %v347_v29  ;;  %686 = vmatprep.mubr.bf16.mxu1 %v349_v30 }
 0x11c   :  { %646 = vmatmul.mubr.bf16.vlgmr.msra.gmra.mxu0 %v346_v31  ;;  %687 = vmatmul.mubr.bf16.vlgmr.msra.gmra.mxu1 %v348_v32 }
 0x1dc   :  { %v792_v33 = vpop.f32.mrf.mxu0  ;;  %v814_v34 = vpop.f32.mrf.mxu1 }
 0x1de   :  { %v793_v36 = vpop.f32.mrf.mxu0  ;;  %v815_v37 = vpop.f32.mrf.mxu1 }
 0x1df   :  { %v794_v38 = vadd.f32 %v793_v36, %v792_v33  ;;  %v816_v42 = vadd.f32 %v815_v37, %v814_v34 }
 0x1e0   :  { %v795_v39 = vpop.f32.mrf.mxu0  ;;  %v817_v40 = vpop.f32.mrf.mxu1 }
 0x1e1   :  { %v648_v41 = vadd.f32 %v794_v38, %v743_v35 }
 0x1e2   :  { %v796_v43 = vpop.f32.mrf.mxu0  ;;  %v818_v44 = vpop.f32.mrf.mxu1 }
 0x1e3   :  { %v689_v45 = vadd.f32 %v816_v42, %v648_v41  ;;  %v797_v46 = vadd.f32 %v796_v43, %v795_v39  ;;  %v819_v48 = vadd.f32 %v818_v44, %v817_v40 }
 0x1e5   :  { %695 = vst [vmem:[#allocation10] sm:$0xff] %v689_v45  ;;  %v651_v47 = vadd.f32 %v797_v46, %v743_v35 }
 0x1e7   :  { %v692_v49 = vadd.f32 %v819_v48, %v651_v47 }
 0x1e9   :  { %696 = vst [vmem:[#allocation10 + $0x8] sm:$0xff] %v692_v49 }
 0x1ea   :  { %992 = shalt.err (!%p989_p10)
}
 0x1eb   :  { %s1019_s17 = smov 128   ;;  %s1020_s18 = smov 8  }
 0x1ec   :  { %708 = dma.vmem_to_hbm [thread:$0]  %s703_s16, 256, %s1074_s5, [#allocation4], %s1019_s17, %s1019_s17, %s1020_s18  }
 0x1ed   :  { %1007 = dma.done.wait [#allocation4], 256  }
 0x1ee   :  { %1008 = vsyncadd [#allocation4], 4294967040 }
 0x1ef   :  { %712 = vsyncpa [#allocation3], 1 }
 0x1f0   :  { %713 = vsyncpa [#allocation6], 1 }
 0x1f1   :  { %714 = vsyncpa [#allocation9], 1 }
 0x1f2   :  { %715 = vsyncpa [#allocation4], 1 }

</bundles_post_ra>
